<compile_context>
chip_gen: v6e
topology: v6e:2x2x1
jax: 0.10.0
libtpu: 0.0.40
codegen_flags: <defaults>
</compile_context>

<pallas_src>
import functools

import jax
import jax.numpy as jnp
from jax import lax
from jax.experimental import pallas as pl
from jax.experimental.pallas import tpu as pltpu


def hier_attn_kernel(params_ref, x_ref, w_tok_ref, w_chk_ref, out_ref,
                     m_sc, l_sc, acc_sc, sumx_sc,
                     *, seq_len, needs_mask, use_mxu):
    """One S-tile step of the hierarchical-attention forward pass.

    params_ref (SMEM f32[4])        : [token_bias, chunk_bias, alpha, 1/S]
    x_ref      (VMEM f32[B, TS, H]) : current S tile of chunk_vectors
    w_tok_ref  (VMEM f32[1, H])     : token-attn weight (resident)
    w_chk_ref  (VMEM f32[1, H])     : chunk-attn weight (resident)
    out_ref    (VMEM f32[B, H])     : output, resident across the S grid
    m_sc/l_sc  (VMEM f32[B, 1])     : online-softmax running max / denominator
    acc_sc     (VMEM f32[B, H])     : unnormalized token-weighted sum
    sumx_sc    (VMEM f32[B, H])     : running sum over S (shared by chunk path)
    """
    s = pl.program_id(0)
    B, TS, H = x_ref.shape

    @pl.when(s == 0)
    def _init():
        m_sc[...] = jnp.full_like(m_sc, -jnp.inf)
        l_sc[...] = jnp.zeros_like(l_sc)
        acc_sc[...] = jnp.zeros_like(acc_sc)
        sumx_sc[...] = jnp.zeros_like(sumx_sc)

    b_tok = params_ref[0]
    b_chk = params_ref[1]
    alpha = params_ref[2]
    inv_s = params_ref[3]

    x = x_ref[...]                                                  # (B, TS, H)

    if needs_mask:
        # Ragged tail tile: rows past seq_len hold undefined data -> zero them
        # and pin their logits to -inf so they contribute nothing.
        idx = lax.broadcasted_iota(jnp.int32, (B, TS), 1)
        valid = idx < (seq_len - s * TS)                            # (B, TS)
        x = jnp.where(valid[:, :, None], x, 0.0)

    # ---- token-level logits for this tile ---------------------------------
    tok_logits = jnp.sum(x * w_tok_ref[...], axis=-1) + b_tok       # (B, TS)
    if needs_mask:
        tok_logits = jnp.where(valid, tok_logits, -jnp.inf)

    # ---- online softmax over S (flash-style running max / denom) ----------
    m_prev = m_sc[...]                                              # (B, 1)
    m_new = jnp.maximum(m_prev, jnp.max(tok_logits, axis=1, keepdims=True))
    rescale = jnp.exp(m_prev - m_new)                               # (B, 1)
    p = jnp.exp(tok_logits - m_new)                                 # (B, TS)
    l_sc[...] = rescale * l_sc[...] + jnp.sum(p, axis=1, keepdims=True)

    if use_mxu:
        # One batched MXU pass computes both contractions:
        #   row 0: sum_s p * x   (token-weighted delta)
        #   row 1: sum_s x       (running sum delta)
        ones = jnp.ones((B, 1, TS), jnp.float32)
        p2 = jnp.concatenate([p[:, None, :], ones], axis=1)         # (B, 2, TS)
        both = lax.dot_general(p2, x, (((2,), (1,)), ((0,), (0,))),
                               preferred_element_type=jnp.float32)  # (B, 2, H)
        acc_sc[...] = rescale * acc_sc[...] + both[:, 0, :]
        sumx_sc[...] = sumx_sc[...] + both[:, 1, :]
    else:
        acc_sc[...] = rescale * acc_sc[...] + jnp.sum(p[:, :, None] * x, axis=1)
        sumx_sc[...] = sumx_sc[...] + jnp.sum(x, axis=1)            # (B, H)
    m_sc[...] = m_new

    # ---- finalize on the last S tile ---------------------------------------
    @pl.when(s == pl.num_programs(0) - 1)
    def _finalize():
        sum_x = sumx_sc[...]                                        # (B, H)
        # One-shot normalizations: exact division (off the hot path).
        token_out = acc_sc[...] / l_sc[...]

        # chunk logits from mean_x = sum_x * (1/S); no second pass over x.
        chk_logits = (jnp.sum(sum_x * w_chk_ref[...], axis=-1, keepdims=True)
                      * inv_s + b_chk)                              # (B, 1)
        # softmax over the BATCH axis (PyTorch dim=0) -- exact semantics.
        cm = jnp.max(chk_logits, axis=0, keepdims=True)
        ce = jnp.exp(chk_logits - cm)
        chk_w = ce / jnp.sum(ce, axis=0, keepdims=True)             # (B, 1)
        chunk_out = chk_w * sum_x                                   # (B, H)

        out_ref[...] = alpha * token_out + (1.0 - alpha) * chunk_out


def _vmem_budget_bytes():
    """Total f32 budget for the double-buffered x tile: ~1/4 of physical VMEM.

    -> 32 MiB (16 MiB/buffer) on v5e/v6e (128 MiB physical),
       16 MiB ( 8 MiB/buffer) on v7x   (64 MiB physical).
    """
    try:
        phys = pltpu.get_tpu_info().vmem_capacity_bytes
    except Exception:
        phys = 128 << 20
    return max(8 << 20, min(32 << 20, phys // 4))


def _pick_s_tile(S, B, H, budget_bytes):
    """Largest S tile (multiple of 8, or whole S) whose double-buffered f32
    footprint fits `budget_bytes`.  Tiles need NOT divide S: the grid uses
    cdiv and the kernel masks the ragged tail tile."""
    max_ts = budget_bytes // (2 * B * H * 4)        # 2x = double buffering
    if S <= max_ts:
        return S                                    # single tile (full dim)
    ts = (max_ts // 8) * 8
    # TODO(synk): if B*H is so large that even TS=8 exceeds VMEM, the hidden
    # dim would also have to be tiled; not needed for realistic shapes.
    return max(ts, 8)


def hierarchical_attention(x, w_tok, b_tok, w_chk, b_chk, alpha,
                           budget_bytes=None):
    """x: (B, S, H) f32; w_tok/w_chk: (1, H) f32; b_tok/b_chk/alpha: scalars."""
    B, S, H = x.shape
    x = x.astype(jnp.float32)
    w_tok = jnp.asarray(w_tok, jnp.float32).reshape(1, H)
    w_chk = jnp.asarray(w_chk, jnp.float32).reshape(1, H)

    if budget_bytes is None:
        budget_bytes = _vmem_budget_bytes()

    TS = _pick_s_tile(S, B, H, budget_bytes)
    n_tiles = pl.cdiv(S, TS)
    needs_mask = (S % TS) != 0
    # Route the two sublane contractions to the MXU only when H is big and
    # 128-aligned (v7x: frees VPU/XLU slots; elsewhere: free filler).
    use_mxu = (H % 128 == 0) and (H >= 512)

    params = jnp.stack([
        jnp.asarray(b_tok, jnp.float32).reshape(()),
        jnp.asarray(b_chk, jnp.float32).reshape(()),
        jnp.asarray(alpha, jnp.float32).reshape(()),
        jnp.float32(1.0 / S),
    ])

    tile_bytes = B * TS * H * 4
    # Double-buffered x tile + scratch/output/weights + headroom, capped so it
    # stays inside physical VMEM on every chip (v7x = 64 MiB).
    vmem_limit = int(min(48 << 20, max(2 * tile_bytes + (8 << 20), 16 << 20)))

    kernel = functools.partial(hier_attn_kernel, seq_len=S,
                               needs_mask=needs_mask, use_mxu=use_mxu)

    out = pl.pallas_call(
        kernel,
        out_shape=jax.ShapeDtypeStruct((B, H), jnp.float32),
        grid_spec=pltpu.PrefetchScalarGridSpec(
            num_scalar_prefetch=0,
            grid=(n_tiles,),
            in_specs=[
                pl.BlockSpec(memory_space=pltpu.MemorySpace.SMEM),   # params
                # Full (unpadded) H: block dim == array dim is exempt from the
                # 128 rule, so x streams with NO HBM pad pass.
                pl.BlockSpec((B, TS, H), lambda s: (0, s, 0)),       # x tile
                pl.BlockSpec((1, H), lambda s: (0, 0)),              # w_tok
                pl.BlockSpec((1, H), lambda s: (0, 0)),              # w_chk
            ],
            out_specs=pl.BlockSpec((B, H), lambda s: (0, 0)),
            scratch_shapes=[
                pltpu.VMEM((B, 1), jnp.float32),    # running max m
                pltpu.VMEM((B, 1), jnp.float32),    # running denom l
                pltpu.VMEM((B, H), jnp.float32),    # unnormalized token acc
                pltpu.VMEM((B, H), jnp.float32),    # running sum_S(x)
            ],
        ),
        compiler_params=pltpu.CompilerParams(
            dimension_semantics=("arbitrary",),     # S axis is a reduction
            vmem_limit_bytes=vmem_limit,
        ),
        cost_estimate=pl.CostEstimate(
            flops=6 * B * S * H,
            transcendentals=B * S + 2 * B,
            bytes_accessed=4 * (B * S * H + 2 * H + B * H + 4),
        ),
    )(params, x, w_tok, w_chk)

    return out


def reference(x, w_tok, b_tok, w_chk, b_chk, alpha):
    """Pure-JAX mirror of the PyTorch forward, for verification."""
    tok_logits = x @ w_tok[0] + b_tok                             # (B, S)
    tok_w = jax.nn.softmax(tok_logits, axis=1)[..., None]         # (B, S, 1)
    token_out = jnp.sum(tok_w * x, axis=1)                        # (B, H)
    chk_logits = x.mean(axis=1) @ w_chk[0] + b_chk                # (B,)
    chk_w = jax.nn.softmax(chk_logits, axis=0)[:, None, None]     # (B, 1, 1)
    chunk_out = jnp.sum(chk_w * x, axis=1)                        # (B, H)
    return alpha * token_out + (1.0 - alpha) * chunk_out


def _make_inputs(key, B, S, H):
    kx, kw1, kb1, kw2, kb2 = jax.random.split(key, 5)
    x = jax.random.normal(kx, (B, S, H), dtype=jnp.float32)
    # nn.Linear(hidden_size, 1) init: U(-1/sqrt(H), 1/sqrt(H)) for weight & bias
    bound = 1.0 / (H ** 0.5)
    w_tok = jax.random.uniform(kw1, (1, H), jnp.float32, -bound, bound)
    b_tok = jax.random.uniform(kb1, (), jnp.float32, -bound, bound)
    w_chk = jax.random.uniform(kw2, (1, H), jnp.float32, -bound, bound)
    b_chk = jax.random.uniform(kb2, (), jnp.float32, -bound, bound)
    return x, w_tok, b_tok, w_chk, b_chk


if __name__ == "__main__":
    key = jax.random.PRNGKey(0)
    k1, k2 = jax.random.split(key)

    # --- primary check: module-sized small shapes (single whole-S tile) -----
    B, S, H = 2, 8, 32
    x, w_tok, b_tok, w_chk, b_chk = _make_inputs(k1, B, S, H)
    alpha = jnp.float32(0.5)

    out = hierarchical_attention(x, w_tok, b_tok, w_chk, b_chk, alpha)
    out = jax.block_until_ready(out)
    ref = reference(x, w_tok, b_tok, w_chk, b_chk, alpha)
    assert out.shape == (B, H)
    assert jnp.allclose(out, ref, atol=1e-5, rtol=1e-5), (out, ref)

    # --- secondary check: multi-tile grid with a masked ragged tail tile ----
    # Tiny budget forces TS=24 -> grid = cdiv(200, 24) = 9, last tile has only
    # 8 valid rows; H=48 is deliberately not 128-aligned (no padding anywhere).
    B2, S2, H2 = 3, 200, 48
    x2, w_tok2, b_tok2, w_chk2, b_chk2 = _make_inputs(k2, B2, S2, H2)
    out2 = hierarchical_attention(x2, w_tok2, b_tok2, w_chk2, b_chk2, alpha,
                                  budget_bytes=32 * 1024)
    out2 = jax.block_until_ready(out2)
    ref2 = reference(x2, w_tok2, b_tok2, w_chk2, b_chk2, alpha)
    assert out2.shape == (B2, H2)
    assert jnp.allclose(out2, ref2, atol=1e-5, rtol=1e-5), (out2, ref2)

    print("KERNEL_OK")
</pallas_src>

<mosaic_0001>
module attributes {stable_mosaic.version = 11 : i64} {
  func.func @hier_attn_kernel(%arg0: i32, %arg1: memref<4xf32, #tpu.memory_space<smem>>, %arg2: memref<2x8x32xf32, #tpu.memory_space<vmem>>, %arg3: memref<1x32xf32, #tpu.memory_space<vmem>>, %arg4: memref<1x32xf32, #tpu.memory_space<vmem>>, %arg5: memref<2x32xf32, #tpu.memory_space<vmem>>, %arg6: memref<2x1xf32, #tpu.memory_space<vmem>>, %arg7: memref<2x1xf32, #tpu.memory_space<vmem>>, %arg8: memref<2x32xf32, #tpu.memory_space<vmem>>, %arg9: memref<2x32xf32, #tpu.memory_space<vmem>>) attributes {dimension_semantics = [#tpu.dimension_semantics<arbitrary>], iteration_bounds = array<i64: 1>, scalar_prefetch = 0 : i64, scratch_operands = 4 : i64, tpu.core_type = #tpu.core_type<tc>, window_params = [{transform_indices = @transform_0, window_bounds = array<i64: 4>}, {transform_indices = @transform_1, window_bounds = array<i64: 2, 8, 32>}, {pipeline_mode = #tpu.pipeline_mode<synchronous>, transform_indices = @transform_2, window_bounds = array<i64: 1, 32>}, {pipeline_mode = #tpu.pipeline_mode<synchronous>, transform_indices = @transform_3, window_bounds = array<i64: 1, 32>}, {pipeline_mode = #tpu.pipeline_mode<synchronous>, transform_indices = @transform_4, window_bounds = array<i64: 2, 32>}]} {
    %c0_i32 = arith.constant 0 : i32
    %0 = arith.cmpi eq, %arg0, %c0_i32 : i32
    %1 = arith.extui %0 : i1 to i32
    %c0_i32_0 = arith.constant 0 : i32
    %2 = arith.cmpi ne, %1, %c0_i32_0 : i32
    scf.if %2 {
      %cst_28 = arith.constant 0xFF800000 : f32
      %47 = vector.broadcast %cst_28 : f32 to vector<2x1xf32>
      %c0_29 = arith.constant 0 : index
      %c0_30 = arith.constant 0 : index
      %48 = vector.load %arg6[%c0_29, %c0_30] : memref<2x1xf32, #tpu.memory_space<vmem>>, vector<2x1xf32>
      tpu.vector_store %arg6[%c0_29, %c0_30], %47 {strides = array<i32>} : memref<2x1xf32, #tpu.memory_space<vmem>>, vector<2x1xf32>,
      %cst_31 = arith.constant 0.000000e+00 : f32
      %49 = vector.broadcast %cst_31 : f32 to vector<2x1xf32>
      %c0_32 = arith.constant 0 : index
      %c0_33 = arith.constant 0 : index
      %50 = vector.load %arg7[%c0_32, %c0_33] : memref<2x1xf32, #tpu.memory_space<vmem>>, vector<2x1xf32>
      tpu.vector_store %arg7[%c0_32, %c0_33], %49 {strides = array<i32>} : memref<2x1xf32, #tpu.memory_space<vmem>>, vector<2x1xf32>,
      %cst_34 = arith.constant 0.000000e+00 : f32
      %51 = vector.broadcast %cst_34 : f32 to vector<2x32xf32>
      %c0_35 = arith.constant 0 : index
      %c0_36 = arith.constant 0 : index
      %52 = vector.load %arg8[%c0_35, %c0_36] : memref<2x32xf32, #tpu.memory_space<vmem>>, vector<2x32xf32>
      tpu.vector_store %arg8[%c0_35, %c0_36], %51 {strides = array<i32>} : memref<2x32xf32, #tpu.memory_space<vmem>>, vector<2x32xf32>,
      %cst_37 = arith.constant 0.000000e+00 : f32
      %53 = vector.broadcast %cst_37 : f32 to vector<2x32xf32>
      %c0_38 = arith.constant 0 : index
      %c0_39 = arith.constant 0 : index
      %54 = vector.load %arg9[%c0_38, %c0_39] : memref<2x32xf32, #tpu.memory_space<vmem>>, vector<2x32xf32>
      tpu.vector_store %arg9[%c0_38, %c0_39], %53 {strides = array<i32>} : memref<2x32xf32, #tpu.memory_space<vmem>>, vector<2x32xf32>,
    } else {
    }
    %c0 = arith.constant 0 : index
    %3 = memref.load %arg1[%c0] : memref<4xf32, #tpu.memory_space<smem>>
    %c1 = arith.constant 1 : index
    %4 = memref.load %arg1[%c1] : memref<4xf32, #tpu.memory_space<smem>>
    %c2 = arith.constant 2 : index
    %5 = memref.load %arg1[%c2] : memref<4xf32, #tpu.memory_space<smem>>
    %c3 = arith.constant 3 : index
    %6 = memref.load %arg1[%c3] : memref<4xf32, #tpu.memory_space<smem>>
    %c0_1 = arith.constant 0 : index
    %c0_2 = arith.constant 0 : index
    %c0_3 = arith.constant 0 : index
    %7 = vector.load %arg2[%c0_1, %c0_2, %c0_3] : memref<2x8x32xf32, #tpu.memory_space<vmem>>, vector<2x8x32xf32>
    %c0_4 = arith.constant 0 : index
    %c0_5 = arith.constant 0 : index
    %8 = vector.load %arg3[%c0_4, %c0_5] : memref<1x32xf32, #tpu.memory_space<vmem>>, vector<1x32xf32>
    %9 = vector.shape_cast %8 : vector<1x32xf32> to vector<1x1x32xf32>
    %10 = vector.broadcast %9 : vector<1x1x32xf32> to vector<2x8x32xf32>
    %11 = arith.mulf %7, %10 : vector<2x8x32xf32>
    %cst = arith.constant dense<0.000000e+00> : vector<2x8xf32>
    %12 = vector.multi_reduction <add>, %11, %cst [2] : vector<2x8x32xf32> to vector<2x8xf32>
    %13 = vector.broadcast %3 : f32 to vector<2x8xf32>
    %14 = arith.addf %12, %13 : vector<2x8xf32>
    %c0_6 = arith.constant 0 : index
    %c0_7 = arith.constant 0 : index
    %15 = vector.load %arg6[%c0_6, %c0_7] : memref<2x1xf32, #tpu.memory_space<vmem>>, vector<2x1xf32>
    %cst_8 = arith.constant dense<0xFF800000> : vector<2xf32>
    %16 = vector.multi_reduction <maximumf>, %14, %cst_8 [1] : vector<2x8xf32> to vector<2xf32>
    %17 = vector.shape_cast %16 : vector<2xf32> to vector<2x1xf32>
    %18 = arith.maximumf %15, %17 : vector<2x1xf32>
    %19 = arith.subf %15, %18 : vector<2x1xf32>
    %20 = math.exp %19 : vector<2x1xf32>
    %21 = vector.broadcast %18 : vector<2x1xf32> to vector<2x8xf32>
    %22 = arith.subf %14, %21 : vector<2x8xf32>
    %23 = math.exp %22 : vector<2x8xf32>
    %c0_9 = arith.constant 0 : index
    %c0_10 = arith.constant 0 : index
    %24 = vector.load %arg7[%c0_9, %c0_10] : memref<2x1xf32, #tpu.memory_space<vmem>>, vector<2x1xf32>
    %25 = arith.mulf %20, %24 : vector<2x1xf32>
    %cst_11 = arith.constant dense<0.000000e+00> : vector<2xf32>
    %26 = vector.multi_reduction <add>, %23, %cst_11 [1] : vector<2x8xf32> to vector<2xf32>
    %27 = vector.shape_cast %26 : vector<2xf32> to vector<2x1xf32>
    %28 = arith.addf %25, %27 : vector<2x1xf32>
    %c0_12 = arith.constant 0 : index
    %c0_13 = arith.constant 0 : index
    %29 = vector.load %arg7[%c0_12, %c0_13] : memref<2x1xf32, #tpu.memory_space<vmem>>, vector<2x1xf32>
    tpu.vector_store %arg7[%c0_12, %c0_13], %28 {strides = array<i32>} : memref<2x1xf32, #tpu.memory_space<vmem>>, vector<2x1xf32>,
    %c0_14 = arith.constant 0 : index
    %c0_15 = arith.constant 0 : index
    %30 = vector.load %arg8[%c0_14, %c0_15] : memref<2x32xf32, #tpu.memory_space<vmem>>, vector<2x32xf32>
    %31 = vector.broadcast %20 : vector<2x1xf32> to vector<2x32xf32>
    %32 = arith.mulf %31, %30 : vector<2x32xf32>
    %33 = vector.shape_cast %23 : vector<2x8xf32> to vector<2x8x1xf32>
    %34 = vector.broadcast %33 : vector<2x8x1xf32> to vector<2x8x32xf32>
    %35 = arith.mulf %34, %7 : vector<2x8x32xf32>
    %cst_16 = arith.constant dense<0.000000e+00> : vector<2x32xf32>
    %36 = vector.multi_reduction <add>, %35, %cst_16 [1] : vector<2x8x32xf32> to vector<2x32xf32>
    %37 = arith.addf %32, %36 : vector<2x32xf32>
    %c0_17 = arith.constant 0 : index
    %c0_18 = arith.constant 0 : index
    %38 = vector.load %arg8[%c0_17, %c0_18] : memref<2x32xf32, #tpu.memory_space<vmem>>, vector<2x32xf32>
    tpu.vector_store %arg8[%c0_17, %c0_18], %37 {strides = array<i32>} : memref<2x32xf32, #tpu.memory_space<vmem>>, vector<2x32xf32>,
    %c0_19 = arith.constant 0 : index
    %c0_20 = arith.constant 0 : index
    %39 = vector.load %arg9[%c0_19, %c0_20] : memref<2x32xf32, #tpu.memory_space<vmem>>, vector<2x32xf32>
    %cst_21 = arith.constant dense<0.000000e+00> : vector<2x32xf32>
    %40 = vector.multi_reduction <add>, %7, %cst_21 [1] : vector<2x8x32xf32> to vector<2x32xf32>
    %41 = arith.addf %39, %40 : vector<2x32xf32>
    %c0_22 = arith.constant 0 : index
    %c0_23 = arith.constant 0 : index
    %42 = vector.load %arg9[%c0_22, %c0_23] : memref<2x32xf32, #tpu.memory_space<vmem>>, vector<2x32xf32>
    tpu.vector_store %arg9[%c0_22, %c0_23], %41 {strides = array<i32>} : memref<2x32xf32, #tpu.memory_space<vmem>>, vector<2x32xf32>,
    %c0_24 = arith.constant 0 : index
    %c0_25 = arith.constant 0 : index
    %43 = vector.load %arg6[%c0_24, %c0_25] : memref<2x1xf32, #tpu.memory_space<vmem>>, vector<2x1xf32>
    tpu.vector_store %arg6[%c0_24, %c0_25], %18 {strides = array<i32>} : memref<2x1xf32, #tpu.memory_space<vmem>>, vector<2x1xf32>,
    %c0_i32_26 = arith.constant 0 : i32
    %44 = arith.cmpi eq, %arg0, %c0_i32_26 : i32
    %45 = arith.extui %44 : i1 to i32
    %c0_i32_27 = arith.constant 0 : i32
    %46 = arith.cmpi ne, %45, %c0_i32_27 : i32
    scf.if %46 {
      %c0_28 = arith.constant 0 : index
      %c0_29 = arith.constant 0 : index
      %47 = vector.load %arg9[%c0_28, %c0_29] : memref<2x32xf32, #tpu.memory_space<vmem>>, vector<2x32xf32>
      %c0_30 = arith.constant 0 : index
      %c0_31 = arith.constant 0 : index
      %48 = vector.load %arg8[%c0_30, %c0_31] : memref<2x32xf32, #tpu.memory_space<vmem>>, vector<2x32xf32>
      %c0_32 = arith.constant 0 : index
      %c0_33 = arith.constant 0 : index
      %49 = vector.load %arg7[%c0_32, %c0_33] : memref<2x1xf32, #tpu.memory_space<vmem>>, vector<2x1xf32>
      %50 = vector.broadcast %49 : vector<2x1xf32> to vector<2x32xf32>
      %51 = arith.divf %48, %50 : vector<2x32xf32>
      %c0_34 = arith.constant 0 : index
      %c0_35 = arith.constant 0 : index
      %52 = vector.load %arg4[%c0_34, %c0_35] : memref<1x32xf32, #tpu.memory_space<vmem>>, vector<1x32xf32>
      %53 = vector.broadcast %52 : vector<1x32xf32> to vector<2x32xf32>
      %54 = arith.mulf %47, %53 : vector<2x32xf32>
      %cst_36 = arith.constant dense<0.000000e+00> : vector<2xf32>
      %55 = vector.multi_reduction <add>, %54, %cst_36 [1] : vector<2x32xf32> to vector<2xf32>
      %56 = vector.shape_cast %55 : vector<2xf32> to vector<2x1xf32>
      %57 = vector.broadcast %6 : f32 to vector<2x1xf32>
      %58 = arith.mulf %56, %57 : vector<2x1xf32>
      %59 = vector.broadcast %4 : f32 to vector<2x1xf32>
      %60 = arith.addf %58, %59 : vector<2x1xf32>
      %cst_37 = arith.constant dense<0xFF800000> : vector<1xf32>
      %61 = vector.multi_reduction <maximumf>, %60, %cst_37 [0] : vector<2x1xf32> to vector<1xf32>
      %62 = vector.shape_cast %61 : vector<1xf32> to vector<1x1xf32>
      %63 = vector.broadcast %62 : vector<1x1xf32> to vector<2x1xf32>
      %64 = arith.subf %60, %63 : vector<2x1xf32>
      %65 = math.exp %64 : vector<2x1xf32>
      %cst_38 = arith.constant dense<0.000000e+00> : vector<1xf32>
      %66 = vector.multi_reduction <add>, %65, %cst_38 [0] : vector<2x1xf32> to vector<1xf32>
      %67 = vector.shape_cast %66 : vector<1xf32> to vector<1x1xf32>
      %68 = vector.broadcast %67 : vector<1x1xf32> to vector<2x1xf32>
      %69 = arith.divf %65, %68 : vector<2x1xf32>
      %70 = vector.broadcast %69 : vector<2x1xf32> to vector<2x32xf32>
      %71 = arith.mulf %70, %47 : vector<2x32xf32>
      %72 = vector.broadcast %5 : f32 to vector<2x32xf32>
      %73 = arith.mulf %72, %51 : vector<2x32xf32>
      %cst_39 = arith.constant 1.000000e+00 : f32
      %74 = arith.subf %cst_39, %5 : f32
      %75 = vector.broadcast %74 : f32 to vector<2x32xf32>
      %76 = arith.mulf %75, %71 : vector<2x32xf32>
      %77 = arith.addf %73, %76 : vector<2x32xf32>
      %c0_40 = arith.constant 0 : index
      %c0_41 = arith.constant 0 : index
      %78 = vector.load %arg5[%c0_40, %c0_41] : memref<2x32xf32, #tpu.memory_space<vmem>>, vector<2x32xf32>
      tpu.vector_store %arg5[%c0_40, %c0_41], %77 {strides = array<i32>} : memref<2x32xf32, #tpu.memory_space<vmem>>, vector<2x32xf32>,
    } else {
    }
    return
  }
  func.func @transform_0(%arg0: i32) -> i32 {
    %c0_i32 = arith.constant 0 : i32
    %c0_i32_0 = arith.constant 0 : i32
    return %c0_i32 : i32
  }
  func.func @transform_1(%arg0: i32) -> (i32, i32, i32) {
    %c0_i32 = arith.constant 0 : i32
    %c0_i32_0 = arith.constant 0 : i32
    %c0_i32_1 = arith.constant 0 : i32
    return %c0_i32, %arg0, %c0_i32_0 : i32, i32, i32
  }
  func.func @transform_2(%arg0: i32) -> (i32, i32) {
    %c0_i32 = arith.constant 0 : i32
    %c0_i32_0 = arith.constant 0 : i32
    %c0_i32_1 = arith.constant 0 : i32
    return %c0_i32, %c0_i32_0 : i32, i32
  }
  func.func @transform_3(%arg0: i32) -> (i32, i32) {
    %c0_i32 = arith.constant 0 : i32
    %c0_i32_0 = arith.constant 0 : i32
    %c0_i32_1 = arith.constant 0 : i32
    return %c0_i32, %c0_i32_0 : i32, i32
  }
  func.func @transform_4(%arg0: i32) -> (i32, i32) {
    %c0_i32 = arith.constant 0 : i32
    %c0_i32_0 = arith.constant 0 : i32
    %c0_i32_1 = arith.constant 0 : i32
    return %c0_i32, %c0_i32_0 : i32, i32
  }
}

</mosaic_0001>

<bundles_post_ra>
// kernel: tpu_custom_call.1
= control target key start
LH: loop header
LB: loop body
LE: loop exit
PB: predicated region body
PF: predicated region fallthrough
CT: control target
= control target key end

     0   :  { %9 = vsyncpa [#allocation9], 0  ;;  %s445_s0 = inlined_call_operand.hbm [shape: f32[4], index: 0, kind: input, shape index: {}]   ;;  %s446_s1 = inlined_call_operand.hbm [shape: f32[2,8,32], index: 1, kind: input, shape index: {}]   ;;  %s447_s2 = inlined_call_operand.vmem [shape: f32[1,32], index: 2, kind: input, shape index: {}]   ;;  %s448_s3 = inlined_call_operand.vmem [shape: f32[1,32], index: 3, kind: input, shape index: {}]   ;;  %s449_s4 = inlined_call_operand.hbm [shape: f32[2,32], index: 4, kind: output, shape index: {}]  }
   0x1   :  { %10 = vsyncpa [#allocation7], 0 }
   0x2   :  { %11 = vsyncpa [#allocation8], 0  ;;  %s355_s15 = smov [#allocation6]   ;;  %s356_s18 = smov [#allocation10]  }
   0x3   :  { %19 = dma.hbm_to_smem %s445_s0, 16, %s355_s15, [#allocation9]  }
   0x4   :  { %s25_s19 = sshll.u32 %s356_s18, 4  ;;  %s26_s19 = int_to_ptr.vmem [resolvable:$true] %s25_s19 }
   0x5   :  { %s317_s20 = scalar_lea.vmem %s26_s19, 256  ;;  %p322_p1 = scmp.lt.s32.totalorder %s26_s19, %s26_s19 }
   0x6   :  { %p318_p0 = scmp.ne.s32.totalorder %s26_s19, %s317_s20  ;;  %p323_p2 = scmp.lt.s32.totalorder %s317_s20, %s317_s20 }
   0x8   :  { %p324_p3 = por %p323_p2, %p322_p1 }
   0xa   :  { %p325_p4 = pnand %p324_p3, %p318_p0 }
   0xc   :  { %328 = shalt.err (!%p325_p4)
}
   0xd   :  { %s357_s21 = smov 128   ;;  %s358_s22 = smov 8  }
   0xe   :  { %31 = dma.hbm_to_vmem [thread:$0]  %s446_s1, 256, %s26_s19, [#allocation7], %s357_s21, %s357_s21, %s358_s22  }
   0xf   :  { %349 = dma.done.wait [#allocation9], 16  }
  0x10   :  { %350 = vsyncadd [#allocation9], 4294967280 }
  0x11   :  { %351 = dma.done.wait [#allocation7], 256  }
  0x12   :  { %352 = vsyncadd [#allocation7], 4294967040 }
  0x13   :  { %42 = sfence }
  0x14   :  { %v394_v0 = vld [vmem:[#allocation10] sm:$0xff]  ;;  %v277_v1 = vld [vmem:[%s447_s2] ss:$0 sm:$0xff]  ;;  %vm68_vm0 = vcmask 261120   ;;  %v399_v2 = vld [vmem:[#allocation10 + $0x8] sm:$0xff]  ;;  %s53_s1 = sld [smem:[#allocation6]]  ;;  %v81_v7 = vlaneseq }
  0x15   :  { %v66_v3 = vmul.f32 %v277_v1, %v394_v0  ;;  %v67_v4 = vmul.f32 %v277_v1, %v399_v2  ;;  %vm91_vm1 = vcmask 1041409   ;;  %vm94_vm2 = vcmask 58368   ;;  %v278_v55 = vld [vmem:[%s448_s3] ss:$0 sm:$0xff]  ;;  %s276_s3 = sld [smem:[#allocation6 + $0x3]]  ;;  %s362_s30 = smov [#allocation11]  }
  0x16   :  { %v82_v8 = vand.u32 127, %v81_v7  ;;  %v84_v9 = vshrl.u32 %v81_v7, 7  ;;  %vm47_vm3 = vcmask 1024   ;;  %v359_v20 = vmov -inf   ;;  %s274_s27 = sld [smem:[#allocation6 + $0x1]]  ;;  %s264_s5 = sshll.u32 %s362_s30, 4  ;;  %s265_s5 = int_to_ptr.vmem [resolvable:$true] %s264_s5 }
  0x17   :  { %v69_v5 = vsel %vm68_vm0, %v66_v3, 0.0  ;;  %v72_v6 = vsel %vm68_vm0, %v67_v4, 0.0  ;;  %48 = vst.msk [vmem:[#allocation2] sm:$0x3] %vm47_vm3, %v359_v20  ;;  %v360_v21 = vmov 0   ;;  %v361_v22 = vmov 0.0   ;;  %p334_p6 = scmp.lt.s32.totalorder %s265_s5, %s265_s5 }
  0x18   :  { %70 = vadd.xlane.f32.xlu0 %v69_v5  ;;  %v405_v12 = vsub.s32 %v82_v8, %v84_v9  ;;  %287 = vset.pattern.permute.xlu1 %v360_v21  ;;  %49 = vst.msk [vmem:[#allocation3] sm:$0x3] %vm47_vm3, %v361_v22  ;;  %v108_v27 = vsub.s32 0, %v84_v9  ;;  %v112_v28 = vsub.s32 1, %v84_v9  ;;  %v181_v36 = vsel %vm68_vm0, %v394_v0, 0.0  ;;  %s275_s28 = sld [smem:[#allocation6 + $0x2]] }
  0x19   :  { %288 = vset.pattern.permute.xlu0 %v360_v21  ;;  %v188_v37 = vsel %vm68_vm0, %v399_v2, 0.0  ;;  %v182_v38 = vrot.slane %v181_v36, 4  ;;  %vm50_vm4 = vcmask 254976   ;;  %vm230_vm5 = vcmask 1041408   ;;  %s329_s6 = scalar_lea.vmem %s265_s5, 32 }
  0x1a   :  { %v75_v11 = vstv %s53_s1  ;;  %v189_v39 = vrot.slane %v188_v37, 4  ;;  %52 = vst.msk [vmem:[#allocation5] sm:$0x3] %vm50_vm4, %v361_v22  ;;  %51 = vst.msk [vmem:[#allocation4] sm:$0x3] %vm50_vm4, %v361_v22  ;;  %p330_p5 = scmp.ne.s32.totalorder %s265_s5, %s329_s6  ;;  %p335_p7 = scmp.lt.s32.totalorder %s329_s6, %s329_s6 }
  0x1b   :  { %v183_v40 = vadd.f32 %v182_v38, %v181_v36 }
  0x1c   :  { %73 = vadd.xlane.f32.xlu0 %v72_v6  ;;  %v190_v41 = vadd.f32 %v189_v39, %v188_v37  ;;  %p336_p8 = por %p335_p7, %p334_p6 }
  0x1d   :  { %v184_v42 = vrot.slane %v183_v40, 2 }
  0x1e   :  { %v78_v23 = vld [vmem:[#allocation2] sm:$0x3]  ;;  %v191_v43 = vrot.slane %v190_v41, 2  ;;  %s253_s29 = ssub.f32 1.0, %s275_s28  ;;  %p337_p9 = pnand %p336_p8, %p330_p5 }
  0x1f   :  { %v185_v46 = vadd.f32 %v184_v42, %v183_v40  ;;  %v122_v5 = vld [vmem:[#allocation3] sm:$0x3] }
  0x20   :  { %v192_v47 = vadd.f32 %v191_v43, %v190_v41 }
  0x21   :  { %v186_v48 = vrot.slane %v185_v46, 1  ;;  %v180_v53 = vld [vmem:[#allocation5] sm:$0x3] }
  0x22   :  { %v193_v49 = vrot.slane %v192_v47, 1 }
  0x23   :  { %v187_v50 = vadd.f32 %v186_v48, %v185_v46 }
  0x24   :  { %v194_v51 = vadd.f32 %v193_v49, %v192_v47 }
  0x26   :  { %v197_v52 = vsel %vm91_vm1, %v194_v51, %v187_v50 }
  0x27   :  { %v199_v54 = vadd.f32 %v197_v52, %v180_v53 }
  0x29   :  { %200 = vst.msk [vmem:[#allocation5] sm:$0x3] %vm50_vm4, %v199_v54 }
  0x30   :  { %v425_v56 = vld [vmem:[#allocation5] sm:$0x3] }
  0x31   :  { %v222_v57 = vmul.f32 %v278_v55, %v425_v56 }
  0x33   :  { %v223_v58 = vsel %vm50_vm4, %v222_v57, 0.0 }
  0xa1   :  { %v71_v10 = vpop.xlane.xlu0 %70 }
  0xa2   :  { %v76_v13 = vadd.f32 %v75_v11, %v71_v10  ;;  %v226_v10 = vstv %s276_s3 }
  0xa4   :  { %v86_v16 = vrot.slane %v76_v13, %v405_v12 }
  0xa5   :  { %v74_v14 = vpop.xlane.xlu0 %73 }
  0xa6   :  { %v77_v15 = vadd.f32 %v75_v11, %v74_v14 }
  0xa8   :  { %v90_v17 = vrot.slane %v77_v15, %v405_v12 }
  0xaa   :  { %v92_v18 = vsel %vm91_vm1, %v90_v17, %v86_v16 }
  0xab   :  { %v95_v19 = vsel %vm94_vm2, %v92_v18, -inf }
  0xac   :  { %96 = vmax.xlane.f32.xlu1 %v95_v19 }
 0x135   :  { %v97_v24 = vpop.xlane.xlu1 %96 }
 0x136   :  { %v98_v25 = vmax.f32 %v78_v23, %v97_v24 }
 0x138   :  { %v99_v26 = vsub.f32 %v78_v23, %v98_v25  ;;  %201 = vst.msk [vmem:[#allocation2] sm:$0x3] %vm47_vm3, %v98_v25  ;;  %104 = vperm.xlu1 %287, %v98_v25  }
 0x13a   :  { %v100_v3 = vmul.f32 1.442695, %v99_v26 }
 0x1b3   :  { %v105_v29 = vpop.permute.xlu1 %104 }
 0x1b4   :  { %v109_v30 = vrot.slane %v105_v29, %v108_v27  ;;  %v113_v31 = vrot.slane %v105_v29, %v112_v28 }
 0x1b6   :  { %v116_v32 = vsub.f32 %v76_v13, %v109_v30  ;;  %v117_v33 = vsub.f32 %v77_v15, %v113_v31  ;;  %v228_v13 = vstv %s274_s27 }
 0x1b8   :  { %v118_v34 = vmul.f32 1.442695, %v116_v32  ;;  %v120_v35 = vmul.f32 1.442695, %v117_v33 }
 0x1ba   :  { %289 = vpow2.f32 %v118_v34 }
 0x1bb   :  { %291 = vpow2.f32 %v120_v35 }
 0x1bc   :  { %293 = vpow2.f32 %v100_v3 }
 0x1c7   :  { %v290_v44 = vpop.eup %289 }
 0x1c8   :  { %v292_v45 = vpop.eup %291  ;;  %127 = vperm.xlu0 %288, %v290_v44  }
 0x1c9   :  { %130 = vperm.xlu1 %287, %v292_v45   ;;  %v294_v4 = vpop.eup %293  ;;  %v148_v45 = vld [vmem:[#allocation4] sm:$0x3] }
 0x1ca   :  { %v123_v6 = vmul.f32 %v294_v4, %v122_v5 }
 0x1e7   :  { %224 = vadd.xlane.f32.xlu0 %v223_v58  ;;  %v251_v58 = vstv %s275_s28 }
 0x243   :  { %v128_v59 = vpop.permute.xlu0 %127 }
 0x244   :  { %v131_v60 = vpop.permute.xlu1 %130  ;;  %v135_v61 = vrot.slane %v128_v59, %v405_v12  ;;  %v157_v28 = vmul.f32 %v128_v59, %v394_v0  ;;  %v254_v59 = vstv %s253_s29 }
 0x245   :  { %v139_v62 = vrot.slane %v131_v60, %v405_v12  ;;  %v158_v27 = vmul.f32 %v131_v60, %v399_v2 }
 0x246   :  { %v159_v31 = vsel %vm68_vm0, %v157_v28, 0.0 }
 0x247   :  { %v140_v63 = vsel %vm91_vm1, %v139_v62, %v135_v61  ;;  %v166_v30 = vsel %vm68_vm0, %v158_v27, 0.0  ;;  %v160_v34 = vrot.slane %v159_v31, 4 }
 0x248   :  { %v142_v1 = vsel %vm94_vm2, %v140_v63, 0.0  ;;  %v167_v33 = vrot.slane %v166_v30, 4 }
 0x249   :  { %143 = vadd.xlane.f32.xlu1 %v142_v1  ;;  %v161_v37 = vadd.f32 %v160_v34, %v159_v31 }
 0x24a   :  { %v168_v36 = vadd.f32 %v167_v33, %v166_v30 }
 0x24b   :  { %v162_v40 = vrot.slane %v161_v37, 2 }
 0x24c   :  { %v169_v39 = vrot.slane %v168_v36, 2 }
 0x24d   :  { %v163_v43 = vadd.f32 %v162_v40, %v161_v37 }
 0x24e   :  { %v170_v42 = vadd.f32 %v169_v39, %v168_v36 }
 0x24f   :  { %v164_v0 = vrot.slane %v163_v43, 1 }
 0x250   :  { %v171_v2 = vrot.slane %v170_v42, 1 }
 0x251   :  { %v165_v46 = vadd.f32 %v164_v0, %v163_v43 }
 0x252   :  { %v172_v47 = vadd.f32 %v171_v2, %v170_v42 }
 0x254   :  { %v175_v50 = vsel %vm91_vm1, %v172_v47, %v165_v46 }
 0x270   :  { %v225_v11 = vpop.xlane.xlu0 %224 }
 0x271   :  { %v227_v12 = vmul.f32 %v226_v10, %v225_v11 }
 0x273   :  { %v229_v14 = vadd.f32 %v228_v13, %v227_v12 }
 0x275   :  { %v231_v15 = vsel %vm230_vm5, %v229_v14, -inf }
 0x276   :  { %v232_v16 = vrot.slane %v231_v15, 4 }
 0x278   :  { %v233_v17 = vmax.f32 %v231_v15, %v232_v16 }
 0x27a   :  { %v234_v18 = vrot.slane %v233_v17, 2 }
 0x27c   :  { %v235_v19 = vmax.f32 %v233_v17, %v234_v18 }
 0x27e   :  { %v236_v20 = vrot.slane %v235_v19, 1 }
 0x280   :  { %v237_v21 = vmax.f32 %v235_v19, %v236_v20 }
 0x282   :  { %v238_v22 = vsub.f32 %v229_v14, %v237_v21 }
 0x284   :  { %v239_v23 = vmul.f32 1.442695, %v238_v22 }
 0x286   :  { %295 = vpow2.f32 %v239_v23 }
 0x293   :  { %v296_v24 = vpop.eup %295 }
 0x294   :  { %v241_v25 = vsel %vm230_vm5, %v296_v24, 0.0 }
 0x295   :  { %v242_v26 = vrot.slane %v241_v25, 4 }
 0x297   :  { %v243_v29 = vadd.f32 %v242_v26, %v241_v25 }
 0x299   :  { %v244_v32 = vrot.slane %v243_v29, 2 }
 0x29b   :  { %v245_v35 = vadd.f32 %v244_v32, %v243_v29 }
 0x29d   :  { %v246_v38 = vrot.slane %v245_v35, 1 }
 0x29f   :  { %v247_v41 = vadd.f32 %v246_v38, %v245_v35 }
 0x2a1   :  { %297 = vrcp.f32 %v247_v41 }
 0x2ae   :  { %v298_v52 = vpop.eup %297 }
 0x2af   :  { %v249_v53 = vmul.f32 %v298_v52, %v296_v24 }
 0x2b1   :  { %v250_v54 = vmul.f32 %v249_v53, %v425_v56 }
 0x2b3   :  { %v255_v62 = vmul.f32 %v254_v59, %v250_v54 }
 0x2d2   :  { %v144_v7 = vpop.xlane.xlu1 %143 }
 0x2d3   :  { %v145_v8 = vadd.f32 %v144_v7, %v123_v6 }
 0x2d5   :  { %147 = vst.msk [vmem:[#allocation3] sm:$0x3] %vm47_vm3, %v145_v8 }
 0x2dc   :  { %v207_v9 = vld [vmem:[#allocation3] sm:$0x3] }
 0x2dd   :  { %210 = vperm.xlu1 %287, %v207_v9  }
 0x2e1   :  { %151 = vperm.xlu1 %287, %v294_v4  }
 0x358   :  { %v211_v44 = vpop.permute.xlu1 %210 }
 0x359   :  { %299 = vrcp.f32 %v211_v44 }
 0x35c   :  { %v152_v48 = vpop.permute.xlu1 %151 }
 0x35d   :  { %v154_v49 = vmul.f32 %v152_v48, %v148_v45 }
 0x35f   :  { %v177_v51 = vadd.f32 %v175_v50, %v154_v49 }
 0x361   :  { %179 = vst.msk [vmem:[#allocation4] sm:$0x3] %vm50_vm4, %v177_v51 }
 0x366   :  { %v300_v55 = vpop.eup %299 }
 0x368   :  { %v206_v57 = vld [vmem:[#allocation4] sm:$0x3] }
 0x369   :  { %v214_v60 = vmul.f32 %v300_v55, %v206_v57 }
 0x36b   :  { %v252_v61 = vmul.f32 %v251_v58, %v214_v60 }
 0x36d   :  { %v256_v63 = vadd.f32 %v255_v62, %v252_v61 }
 0x36f   :  { %257 = vst.msk [vmem:[#allocation11] sm:$0x3] %vm50_vm4, %v256_v63 }
 0x370   :  { %340 = shalt.err (!%p337_p9)
}
 0x371   :  { %267 = dma.vmem_to_hbm [thread:$0]  %s265_s5, 32, %s449_s4, [#allocation8]  }
 0x372   :  { %353 = dma.done.wait [#allocation8], 32  }
 0x373   :  { %354 = vsyncadd [#allocation8], 4294967264 }
 0x374   :  { %271 = vsyncpa [#allocation7], 1 }
 0x375   :  { %272 = vsyncpa [#allocation8], 1 }
 0x376   :  { %273 = vsyncpa [#allocation9], 1 }

</bundles_post_ra>
